<compile_context>
chip_gen: v7x
topology: tpu7x:2x2x1
jax: 0.10.0
libtpu: 0.0.40
codegen_flags: <defaults>
</compile_context>

<pallas_src>
import math

import numpy as np
import jax
import jax.numpy as jnp
from jax.experimental import pallas as pl
from jax.experimental.pallas import tpu as pltpu


def _round_up(x, m):
    return (x + m - 1) // m * m


# --------------------------------------------------------------------------------------
# Kernel 1: grouped typed-linear over contiguous per-relation edge tiles.
#   tile_rel_ref : scalar-prefetch (num_e_tiles_A,) int32 -- relation id of each edge tile
#   x_ref        : (te, fin_p) bf16  gathered (and norm-scaled) source features
#   w_ref        : (1, fin_p, tfo) bf16  weight slab of THIS tile's relation / fout tile
#   m_ref        : (te, tfo) bf16   output messages
# --------------------------------------------------------------------------------------
def typed_linear_kernel(tile_rel_ref, x_ref, w_ref, m_ref):
    m_ref[...] = jnp.dot(x_ref[...], w_ref[0],
                         preferred_element_type=jnp.float32).astype(m_ref.dtype)


# --------------------------------------------------------------------------------------
# Kernel 2: destination-tile scatter-sum + bias + self-loop.
#   grid = (num_n_tiles [parallel], num_fo [parallel], T_max [arbitrary, reduction last])
#   The edge-tile index for (i, t) is offsets[i] + min(t, counts[i]-1); steps with
#   t >= counts[i] revisit the previous block (DMA skipped) and are masked by pl.when.
# --------------------------------------------------------------------------------------
def scatter_kernel(off_ref, cnt_ref, dst_ref, m_ref, feat_ref, loopw_ref, bias_ref, out_ref):
    i = pl.program_id(0)              # node tile
    t = pl.program_id(2)              # edge-tile reduction step
    tn = out_ref.shape[0]

    @pl.when(t == 0)
    def _init():
        # bias + self-loop once per (node tile, fout tile); scatter accumulates on top.
        out_ref[...] = bias_ref[...] + jnp.dot(
            feat_ref[...], loopw_ref[...], preferred_element_type=jnp.float32)

    @pl.when(t < cnt_ref[i])
    def _scatter():
        row_ids = jax.lax.broadcasted_iota(jnp.int32, (tn, 1), 0)            # (tn,1)
        onehot = (row_ids == (dst_ref[...] - i * tn)).astype(jnp.bfloat16)   # (tn,te2)
        out_ref[...] += jnp.dot(onehot, m_ref[...],
                                preferred_element_type=jnp.float32)
    # TODO(synk): activation=None, dropout(eval)=identity, layer_norm=False, edge weight
    # 'w' absent (module defaults) -- not implemented beyond defaults.


def rel_graph_conv(feat, src, dst, etypes, norm, W, loop_w, h_bias,
                   *, te=256, te2=256, tn=256, tfo=512):
    N, Fin = feat.shape
    R, _, Fout = W.shape
    E = int(src.shape[0])

    if norm is None:
        norm = jnp.ones((E,), jnp.float32)

    # tiling hygiene (block dims must respect (8/16, 128) tiling)
    te = _round_up(te, 16)
    te2 = _round_up(te2, 128)
    tn = _round_up(tn, 16)

    fin_p = _round_up(Fin, 128)
    fout_p = _round_up(Fout, 128)
    n_p = _round_up(N, tn)
    num_n_tiles = n_p // tn
    tfo = max(128, min(_round_up(tfo, 128), fout_p))
    tfo = math.gcd(fout_p, tfo)          # multiple of 128 that divides fout_p
    num_fo = fout_p // tfo

    # ---- host-side edge prep (concrete indices; numpy) --------------------------------
    src_np = np.asarray(src, np.int32)
    dst_np = np.asarray(dst, np.int32)
    et_np = np.asarray(etypes, np.int32)
    norm_np = np.asarray(norm, np.float32).reshape(-1)

    # Ordering A: relation-sorted, each relation segment padded to `te` rows (kernel 1).
    if E > 0:
        orderA = np.argsort(et_np, kind="stable")
        et_sorted = et_np[orderA]
        counts_r = np.bincount(et_sorted, minlength=R)
        tiles_r = np.where(counts_r > 0, -(-counts_r // te), 0)
        offA_rows = np.concatenate([[0], np.cumsum(tiles_r * te)])[:-1]
        startA = np.concatenate([[0], np.cumsum(counts_r)])[:-1]
        posA_sorted = offA_rows[et_sorted] + (np.arange(E) - startA[et_sorted])
        posA = np.empty(E, np.int64)
        posA[orderA] = posA_sorted                      # original edge -> padded A row
        e_p1 = int(tiles_r.sum() * te)
        srcA = np.zeros(e_p1, np.int32)
        normA = np.zeros(e_p1, np.float32)              # padded rows: norm 0 -> zero x row
        srcA[posA] = src_np
        normA[posA] = norm_np
        tile_rel = np.repeat(np.arange(R, dtype=np.int32), tiles_r)
    else:
        e_p1 = te
        srcA = np.zeros(e_p1, np.int32)
        normA = np.zeros(e_p1, np.float32)
        tile_rel = np.zeros(1, np.int32)
        posA = np.zeros(0, np.int64)
    num_e_tiles_A = e_p1 // te

    # Ordering B: destination-node-tile sorted, every node tile owns >= 1 edge tile of
    # `te2` rows; padded rows get dst = n_p (out of range for every node tile).
    ntile = (dst_np // tn) if E > 0 else np.zeros(0, np.int32)
    counts_i = np.bincount(ntile, minlength=num_n_tiles)
    tilesB_i = np.maximum(1, -(-counts_i // te2))
    offB_rows = np.concatenate([[0], np.cumsum(tilesB_i * te2)])[:-1]
    e_p2 = int(tilesB_i.sum() * te2)
    permB = np.zeros(e_p2, np.int64)                    # padded rows read m[0]; killed by dst
    dstB = np.full(e_p2, n_p, np.int32)
    if E > 0:
        orderB = np.argsort(ntile, kind="stable")
        ntile_sorted = ntile[orderB]
        startB = np.concatenate([[0], np.cumsum(counts_i)])[:-1]
        posB_sorted = offB_rows[ntile_sorted] + (np.arange(E) - startB[ntile_sorted])
        permB[posB_sorted] = posA[orderB]
        dstB[posB_sorted] = dst_np[orderB]
    tile_offsets = (offB_rows // te2).astype(np.int32)  # per node tile: first edge-tile idx
    tile_counts = tilesB_i.astype(np.int32)             # per node tile: #edge tiles (>= 1)
    T_max = int(tilesB_i.max())

    # ---- dense operands: zero-pad to lane-dense dims; bf16 pre-cast for MXU streams ----
    feat_f32 = jnp.zeros((n_p, fin_p), jnp.float32).at[:N, :Fin].set(feat.astype(jnp.float32))
    feat_bf = feat_f32.astype(jnp.bfloat16)
    W_bf = jnp.zeros((R, fin_p, fout_p), jnp.bfloat16).at[:, :Fin, :Fout].set(
        W.astype(jnp.bfloat16))
    loopw_bf = jnp.zeros((fin_p, fout_p), jnp.bfloat16).at[:Fin, :Fout].set(
        loop_w.astype(jnp.bfloat16))
    bias_f32 = jnp.zeros((1, fout_p), jnp.float32).at[0, :Fout].set(h_bias.astype(jnp.float32))

    # source gather + edge-norm fold (f32 scale, then bf16 stream); XLA gather in wrapper
    x_srcA = (feat_f32[jnp.asarray(srcA)] *
              jnp.asarray(normA)[:, None]).astype(jnp.bfloat16)          # (e_p1, fin_p)

    vmem_limit = 48 * 1024 * 1024     # safe on v7x (64 MiB/TC); generous on v5e/v6e

    # ---- call 1: grouped typed-linear, one matmul per (edge tile, fout tile) -----------
    m = pl.pallas_call(
        typed_linear_kernel,
        out_shape=jax.ShapeDtypeStruct((e_p1, fout_p), jnp.bfloat16),
        grid_spec=pltpu.PrefetchScalarGridSpec(
            num_scalar_prefetch=1,
            grid=(num_e_tiles_A, num_fo),
            in_specs=[
                pl.BlockSpec((te, fin_p), lambda t, j, rel: (t, 0)),
                pl.BlockSpec((1, fin_p, tfo), lambda t, j, rel: (rel[t], 0, j)),
            ],
            out_specs=pl.BlockSpec((te, tfo), lambda t, j, rel: (t, j)),
        ),
        compiler_params=pltpu.CompilerParams(
            dimension_semantics=("parallel", "parallel"),
            vmem_limit_bytes=vmem_limit),
    )(jnp.asarray(tile_rel, jnp.int32), x_srcA, W_bf)

    # permute messages into destination-tile order (bf16 gather in wrapper)
    m_dst = m[jnp.asarray(permB, jnp.int32)]                 # (e_p2, fout_p) bf16
    dstB2d = jnp.asarray(dstB).reshape(1, e_p2)

    def _etile(i, t, off, cnt):
        # clamp so t >= counts[i] revisits the segment's last tile (DMA skipped, masked)
        return off[i] + jnp.minimum(t, cnt[i] - 1)

    # ---- call 2: destination-aware scatter-sum + bias + self-loop ----------------------
    out_p = pl.pallas_call(
        scatter_kernel,
        out_shape=jax.ShapeDtypeStruct((n_p, fout_p), jnp.float32),
        grid_spec=pltpu.PrefetchScalarGridSpec(
            num_scalar_prefetch=2,
            grid=(num_n_tiles, num_fo, T_max),
            in_specs=[
                pl.BlockSpec((1, te2),
                             lambda i, j, t, off, cnt: (0, _etile(i, t, off, cnt))),
                pl.BlockSpec((te2, tfo),
                             lambda i, j, t, off, cnt: (_etile(i, t, off, cnt), j)),
                pl.BlockSpec((tn, fin_p), lambda i, j, t, off, cnt: (i, 0)),
                pl.BlockSpec((fin_p, tfo), lambda i, j, t, off, cnt: (0, j)),
                pl.BlockSpec((1, tfo), lambda i, j, t, off, cnt: (0, j)),
            ],
            out_specs=pl.BlockSpec((tn, tfo), lambda i, j, t, off, cnt: (i, j)),
        ),
        compiler_params=pltpu.CompilerParams(
            dimension_semantics=("parallel", "parallel", "arbitrary"),
            vmem_limit_bytes=vmem_limit),
    )(jnp.asarray(tile_offsets), jnp.asarray(tile_counts),
      dstB2d, m_dst, feat_bf, loopw_bf, bias_f32)

    return out_p[:N, :Fout]


def ref_forward(feat, src, dst, etypes, norm, W, loop_w, h_bias):
    # plain-JAX f32 reference for correctness
    x_src = feat[src]                                       # (E, Fin)
    m = jnp.einsum("ef,efo->eo", x_src, W[etypes])          # typed linear
    m = m * norm.reshape(-1, 1)
    N = feat.shape[0]
    h = jnp.zeros((N, W.shape[2]), jnp.float32).at[dst].add(m)
    h = h + h_bias[None, :]
    h = h + feat @ loop_w
    return h


if __name__ == "__main__":
    key = jax.random.PRNGKey(0)
    N, E, Fin, Fout, R = 16, 32, 16, 32, 3

    k = jax.random.split(key, 8)
    feat = jax.random.normal(k[0], (N, Fin), jnp.float32)
    src = jax.random.randint(k[1], (E,), 0, N, jnp.int32)
    dst = jax.random.randint(k[2], (E,), 0, N, jnp.int32)
    etypes = jax.random.randint(k[3], (E,), 0, R, jnp.int32)
    norm = jax.random.uniform(k[4], (E,), jnp.float32, 0.1, 1.0)

    # TypedLinear weight (R, Fin, Fout); loop_weight xavier-uniform-ish; bias zeros
    W = jax.random.normal(k[5], (R, Fin, Fout), jnp.float32) * 0.1
    gain = jnp.sqrt(2.0)  # calculate_gain('relu')
    bound = gain * jnp.sqrt(6.0 / (Fin + Fout))
    loop_w = jax.random.uniform(k[6], (Fin, Fout), jnp.float32, -bound, bound)
    h_bias = jnp.zeros((Fout,), jnp.float32)

    out = rel_graph_conv(feat, src, dst, etypes, norm, W, loop_w, h_bias)
    out = jax.block_until_ready(out)

    ref = ref_forward(feat, src, dst, etypes, norm, W, loop_w, h_bias)
    assert out.shape == (N, Fout)
    # bf16 MXU operands with f32 accumulation -> compare at ~1e-2 level
    assert jnp.allclose(out, ref, atol=2e-2, rtol=2e-2), "mismatch vs reference"
    print("KERNEL_OK")
</pallas_src>

<mosaic_0001>
module attributes {stable_mosaic.version = 11 : i64} {
  func.func @typed_linear_kernel(%arg0: i32, %arg1: i32, %arg2: memref<3xi32, #tpu.memory_space<smem>>, %arg3: memref<256x128xbf16, #tpu.memory_space<vmem>>, %arg4: memref<1x128x128xbf16, #tpu.memory_space<vmem>>, %arg5: memref<256x128xbf16, #tpu.memory_space<vmem>>) attributes {dimension_semantics = [#tpu.dimension_semantics<parallel>, #tpu.dimension_semantics<parallel>], iteration_bounds = array<i64: 3, 1>, scalar_prefetch = 1 : i64, scratch_operands = 0 : i64, tpu.core_type = #tpu.core_type<tc>, window_params = [{transform_indices = @transform_0, window_bounds = array<i64: 256, 128>}, {transform_indices = @transform_1, window_bounds = array<i64: 1, 128, 128>}, {transform_indices = @transform_2, window_bounds = array<i64: 256, 128>}]} {
    %c0 = arith.constant 0 : index
    %c0_0 = arith.constant 0 : index
    %0 = vector.load %arg3[%c0, %c0_0] : memref<256x128xbf16, #tpu.memory_space<vmem>>, vector<256x128xbf16>
    %c0_1 = arith.constant 0 : index
    %c0_2 = arith.constant 0 : index
    %c0_3 = arith.constant 0 : index
    %1 = vector.load %arg4[%c0_1, %c0_2, %c0_3] : memref<1x128x128xbf16, #tpu.memory_space<vmem>>, vector<1x128x128xbf16>
    %2 = vector.shape_cast %1 : vector<1x128x128xbf16> to vector<128x128xbf16>
    %cst = arith.constant dense<0.000000e+00> : vector<256x128xf32>
    %3 = tpu.matmul %0, %2, %cst {dimension_numbers = #tpu.dot_dimension_numbers<[1], [0], [0], [1], [0, 0, 1, 1], [], []>} : vector<256x128xbf16>, vector<128x128xbf16>, vector<256x128xf32> -> vector<256x128xf32>
    %4 = arith.truncf %3 : vector<256x128xf32> to vector<256x128xbf16>
    %c0_4 = arith.constant 0 : index
    %c0_5 = arith.constant 0 : index
    %5 = vector.load %arg5[%c0_4, %c0_5] : memref<256x128xbf16, #tpu.memory_space<vmem>>, vector<256x128xbf16>
    tpu.vector_store %arg5[%c0_4, %c0_5], %4 {strides = array<i32>} : memref<256x128xbf16, #tpu.memory_space<vmem>>, vector<256x128xbf16>,
    return
  }
  func.func @transform_0(%arg0: i32, %arg1: i32, %arg2: memref<3xi32, #tpu.memory_space<smem>>) -> (i32, i32) {
    %c0_i32 = arith.constant 0 : i32
    %c0_i32_0 = arith.constant 0 : i32
    return %arg0, %c0_i32 : i32, i32
  }
  func.func @transform_1(%arg0: i32, %arg1: i32, %arg2: memref<3xi32, #tpu.memory_space<smem>>) -> (i32, i32, i32) {
    %0 = arith.index_cast %arg0 : i32 to index
    %1 = memref.load %arg2[%0] : memref<3xi32, #tpu.memory_space<smem>>
    %c0_i32 = arith.constant 0 : i32
    %c0_i32_0 = arith.constant 0 : i32
    return %1, %c0_i32, %arg1 : i32, i32, i32
  }
  func.func @transform_2(%arg0: i32, %arg1: i32, %arg2: memref<3xi32, #tpu.memory_space<smem>>) -> (i32, i32) {
    %c0_i32 = arith.constant 0 : i32
    return %arg0, %arg1 : i32, i32
  }
}

</mosaic_0001>

<bundles_post_ra>
// kernel: tpu_custom_call.1
= control target key start
LH: loop header
LB: loop body
LE: loop exit
PB: predicated region body
PF: predicated region fallthrough
CT: control target
= control target key end

     0   :  { %s1866_s0 = inlined_call_operand.hbm [shape: s32[3], index: 0, kind: input, shape index: {}]   ;;  %s1867_s1 = inlined_call_operand.hbm [shape: bf16[768,128], index: 1, kind: input, shape index: {}]   ;;  %s1868_s2 = inlined_call_operand.hbm [shape: bf16[3,128,128], index: 2, kind: input, shape index: {}]   ;;  %s1869_s3 = inlined_call_operand.hbm [shape: bf16[768,128], index: 3, kind: output, shape index: {}]  }
   0x1   :  { %1878 = sst [smem:[#allocation17_spill]] %s1867_s1  ;;  %s1284_s14 = scalar_lea.hbm %s1866_s0, 16 }
   0x2   :  { %p1285_p0 = scmp.ne.s32.totalorder %s1866_s0, %s1284_s14  ;;  %p1288_p1 = scmp.lt.u32.totalorder %s1284_s14, %s1866_s0 }
   0x4   :  { %p1290_p2 = pnand %p1288_p1, %p1285_p0 }
   0x6   :  { %1293 = shalt.err (!%p1290_p2)  }
   0x7   :  { %s1468_s19 = smov [#allocation3]  }
   0x8   :  { %9 = dma.hbm_to_smem %s1866_s0, 16, %s1468_s19, [#allocation2] }
   0x9   :  { %1418 = dma.done.wait [#allocation2], 16 }
   0xa   :  { %1419 = vsyncadd [#allocation2], 4294967280 }
   0xb   :  { %11 = sfence }
   0xc   :  { %12 = vsyncpa [#allocation5], 0 }
   0xd   :  { %14 = vsyncpa [#allocation5 + $0x1], 0 }
   0xe   :  { %15 = vsyncpa [#allocation8], 0 }
   0xf   :  { %17 = vsyncpa [#allocation8 + $0x1], 0 }
  0x10   :  { %18 = vsyncpa [#allocation6], 0 }
  0x11   :  { %20 = vsyncpa [#allocation6 + $0x1], 0  ;;  %s1508_s22 = smov 0   ;;  %s1510_s23 = smov 0  }
  0x12   :  { %s1512_s24 = smov 0   ;;  %s1514_s25 = smov 0  }
  0x13   :  { %s1516_s26 = smov 0   ;;  %s1518_s0 = smov 0  }
  0x14   :  { %s1520_s27 = smov 0   ;;  %s1522_s28 = smov 0  }
  0x15   :  { %s1524_s29 = smov 0  }
  0x16 LB: > { %s867_s30 = sadd.s32 4294967295, %s1466_s29   ;;  %s868_s4 = sadd.s32 4294967294, %s1466_s29   ;;  %s1466_s29 = sphi %s1524_s29, %s26_s29   ;;  %s1462_s28 = sphi %s1522_s28, %s1909_s28   ;;  %s1458_s27 = sphi %s1520_s27, %s1908_s27   ;;  %s1454_s0 = sphi %s1518_s0, %s1907_s0   ;;  %s1450_s26 = sphi %s1516_s26, %s1906_s26   ;;  %s1446_s25 = sphi %s1514_s25, %s1905_s25   ;;  %s1442_s24 = sphi %s1512_s24, %s1904_s24   ;;  %s1438_s23 = sphi %s1510_s23, %s1903_s23   ;;  %s1434_s22 = sphi %s1508_s22, %s1902_s22  }
  0x17   : > { %s38_s5 = sadd.s32 1, %s1462_s28  ;;  %s45_s6 = sadd.s32 1, %s1454_s0 }
  0x18   : > { %p40_p3 = scmp.ge.s32.totalorder %s38_s5, 3  ;;  %p52_p4 = scmp.ne.s32.totalorder %s1454_s0, %s1450_s26 }
  0x19   : > { %p1871_p5 = scmp.eq.s32.totalorder %s1466_s29, 0  ;;  %p58_p6 = scmp.ne.s32.totalorder %s1450_s26, %s1446_s25 }
  0x1a   : > { %s1911_s5 = smov (%p40_p3, %s38_s5), 0  ;;  %p1573_p8 = scmp.eq.s32.totalorder %s867_s30, 0 }
  0x1b   : > { %1879 = sst [smem:[#allocation16_spill]] %s1911_s5  ;;  %p1569_p7 = por %p1871_p5, %p52_p4 }
  0x1c   : > { %s42_s9 = ssub.s32 %s1462_s28, %s1911_s5  ;;  %s1580_s10 = sld [smem:[#allocation3 + %s1462_s28]] }
  0x1d   : > { %p43_p9 = scmp.eq.s32.totalorder %s42_s9, 0  ;;  %p1587_p10 = por %p1573_p8, %p58_p6 }
  0x1e   : > { %s1592_s12 = sld [smem:[#allocation3 + %s1911_s5]]  ;;  %p114_p11 = scmp.eq.s32.totalorder %s867_s30, 2 }
  0x1f   : > { %s1882_s11 = scalar_select %p1587_p10, 1, 0 }
  0x20   : > { %s1595_s13 = scalar_select %p43_p9, %s1454_s0, %s45_s6  }
  0x21   : > { %p1600_p12 = por %p114_p11, %p52_p4  ;;  %p120_p13 = scmp.eq.s32.totalorder %s868_s4, 2 }
  0x22   : > { %p1870_p0 = scmp.lt.s32.totalorder %s1466_s29, 3  ;;  %s140_s16 = sand.u32 1, %s1454_s0  }
  0x23   : > { %s1883_s14 = scalar_select %p1600_p12, 1, 0 }
  0x24   : > { %p1608_p1 = por %p120_p13, %p58_p6  ;;  %s871_s17 = sshll.u32 %s140_s16, 7 }
  0x25   : > { %s942_s18 = sshll.u32 %s1462_s28, 11  ;;  %s1885_s1 = sld [smem:[#allocation17_spill]] }
  0x26   : > { %s1884_s15 = scalar_select %p1608_p1, 1, 0 }
  0x27   : > { %s144_s30 = scalar_lea.vmem [#allocation4], %s871_s17  ;;  %p1625_p2 = pnand %p1870_p0, %p1569_p7 }
  0x28   : > { %s151_s4 = sshll.u32 %s144_s30, 4  ;;  %s1630_s9 = scalar_lea.sflag [#allocation5], %s140_s16  ;;  %s1619_s4 = int_to_ptr.vmem [resolvable:$true] %s151_s4 }
  0x29   : > { %p1296_p6 = pneg %p1625_p2 }
  0x2b   : > { %s1617_s21 = scalar_lea.hbm %s1885_s1, %s942_s18  ;;  %s1299_s19 = scalar_lea.hbm %s1885_s1, 6144 }
  0x2c   : > { %s1294_s18 = scalar_lea.hbm %s1617_s21, 2048  ;;  %p1300_p7 = scmp.lt.u32.totalorder %s1617_s21, %s1885_s1 }
  0x2d   : > { %p1295_p4 = scmp.ne.s32.totalorder %s1617_s21, %s1294_s18  ;;  %p1301_p13 = scmp.lt.u32.totalorder %s1299_s19, %s1294_s18 }
  0x2e   : > { %p1303_p5 = scmp.lt.u32.totalorder %s1294_s18, %s1617_s21 }
  0x2f   : > { %p1297_p9 = pnand %p1296_p6, %p1295_p4  ;;  %p1302_p0 = por %p1301_p13, %p1300_p7 }
  0x31   : > { %p1298_p11 = pneg %p1297_p9  ;;  %p1304_p3 = por %p1303_p5, %p1302_p0 }
  0x33   : > { %p1305_p1 = pnand %p1304_p3, %p1298_p11 }
  0x35   : > { %1308 = shalt.err (!%p1305_p1)
}
  0x36   : > { %s1309_s16 = scalar_lea.vmem %s1619_s4, 2048  ;;  %s1469_s17 = smov [#allocation4]  }
  0x37   : > { %p1310_p4 = scmp.ne.s32.totalorder %s1619_s4, %s1309_s16  ;;  %s1314_s7 = sshll.u32 %s1469_s17, 4  ;;  %s1315_s7 = int_to_ptr.vmem [resolvable:$false] %s1314_s7 }
  0x38   : > { %s1316_s20 = scalar_lea.vmem %s1315_s7, 4096  ;;  %p1317_p10 = scmp.lt.s32.totalorder %s1619_s4, %s1315_s7 }
  0x39   : > { %p1312_p9 = pnand %p1310_p4, %p1296_p6  ;;  %p1318_p7 = scmp.lt.s32.totalorder %s1316_s20, %s1309_s16 }
  0x3b   : > { %p1313_p12 = pneg %p1312_p9  ;;  %p1319_p13 = por %p1318_p7, %p1317_p10 }
  0x3d   : > { %p1320_p5 = pnand %p1319_p13, %p1313_p12 }
  0x3f   : > { %1323 = shalt.err (!%p1320_p5)
}
  0x40   : > { %s1874_s18 = smov 64   ;;  %s1875_s19 = smov 4  }
  0x41   : > { %1171 = dma.hbm_to_vmem [thread:$0]  (!%p1625_p2), %s1617_s21, 2048, %s1619_s4, %s1630_s9, %s1874_s18, %s1874_s18, %s1875_s19  }
  0x42   : > { %p182_p10 = scmp.lt.s32.totalorder %s1466_s29, 4  ;;  %p1887_p12 = scmp.ge.s32.totalorder %s1466_s29, 1 }
  0x43   : > { %s70_s16 = ssub.s32 %s1580_s10, %s1592_s12  ;;  %s75_s17 = sadd.s32 1, %s1442_s24 }
  0x44   : > { %p1664_p0 = pnand %p1887_p12, %p182_p10  ;;  %p73_p1 = scmp.eq.s32.totalorder %s70_s16, 0 }
  0x45   : > { %p82_p3 = scmp.ne.s32.totalorder %s1442_s24, %s1438_s23  ;;  %p88_p6 = scmp.ne.s32.totalorder %s1438_s23, %s1434_s22 }
  0x46   : > { %s161_s7 = sand.u32 1, %s1442_s24   ;;  %p1889_p11 = scmp.eq.s32.totalorder %s1466_s29, 0 }
  0x47   : > { %s1677_s6 = scalar_select %p73_p1, %s1442_s24, %s75_s17  }
  0x48   : > { %p84_p4 = por %p82_p3, %p1889_p11  ;;  %p1683_p2 = por %p88_p6, %p1573_p8 }
  0x49   : > { %s874_s4 = sshll.u32 %s161_s7, 6  ;;  %p1891_p9 = scmp.lt.s32.totalorder %s1466_s29, 3 }
  0x4a   : > { %s1890_s21 = scalar_select %p1683_p2, 1, 0 }
  0x4b   : > { %p1689_p7 = pnand %p1891_p9, %p84_p4  ;;  %p1893_p13 = pmov %p1891_p9 }
  0x4c   : > { %s1161_s10 = scalar_select %p84_p4, [#allocation3], [#allocation10] }
  0x4d   : > { %s1162_s22 = scalar_select %p84_p4, %s1462_s28, 0 }
  0x4e   : > { %s1913_s10 = smov (!%p1893_p13, %s1161_s10), [#allocation11]  ;;  %p1894_p5 = pmov %p1891_p9 }
  0x4f   : > { %s165_s8 = scalar_lea.vmem [#allocation7], %s874_s4  ;;  %s1705_s1 = scalar_lea.sflag [#allocation8], %s161_s7 }
  0x50   : > { %s1915_s22 = smov (!%p1894_p5, %s1162_s22), 0  ;;  %s174_s20 = sshll.u32 %s165_s8, 4  ;;  %s1698_s20 = int_to_ptr.vmem [resolvable:$true] %s174_s20 }
  0x51   : > { %s166_s12 = sld [smem:[%s1913_s10 + %s1915_s22]]  ;;  %p1326_p10 = pneg %p1689_p7 }
  0x52   : > { %s1329_s18 = scalar_lea.hbm %s1868_s2, 3072 }
  0x57   : > { %s943_s16 = sshll.u32 %s166_s12, 10 }
  0x58   : > { %s1703_s19 = scalar_lea.hbm %s1868_s2, %s943_s16 }
  0x59   : > { %s1324_s5 = scalar_lea.hbm %s1703_s19, 1024  ;;  %p1330_p3 = scmp.lt.u32.totalorder %s1703_s19, %s1868_s2 }
  0x5a   : > { %p1325_p8 = scmp.ne.s32.totalorder %s1703_s19, %s1324_s5  ;;  %p1331_p6 = scmp.lt.u32.totalorder %s1329_s18, %s1324_s5 }
  0x5b   : > { %p1333_p4 = scmp.lt.u32.totalorder %s1324_s5, %s1703_s19 }
  0x5c   : > { %p1327_p12 = pnand %p1326_p10, %p1325_p8  ;;  %p1332_p11 = por %p1331_p6, %p1330_p3 }
  0x5e   : > { %p1328_p1 = pneg %p1327_p12  ;;  %p1334_p9 = por %p1333_p4, %p1332_p11 }
  0x60   : > { %p1335_p13 = pnand %p1334_p9, %p1328_p1 }
  0x62   : > { %1338 = shalt.err (!%p1335_p13)
}
  0x63   : > { %s1339_s7 = scalar_lea.vmem %s1698_s20, 1024  ;;  %s1472_s8 = smov [#allocation7]  }
  0x64   : > { %p1340_p5 = scmp.ne.s32.totalorder %s1698_s20, %s1339_s7  ;;  %s1344_s16 = sshll.u32 %s1472_s8, 4  ;;  %s1345_s16 = int_to_ptr.vmem [resolvable:$false] %s1344_s16 }
  0x65   : > { %s1346_s17 = scalar_lea.vmem %s1345_s16, 2048  ;;  %p1347_p2 = scmp.lt.s32.totalorder %s1698_s20, %s1345_s16 }
  0x66   : > { %p1342_p8 = pnand %p1340_p5, %p1326_p10  ;;  %p1348_p3 = scmp.lt.s32.totalorder %s1346_s17, %s1339_s7 }
  0x68   : > { %p1343_p12 = pneg %p1342_p8  ;;  %p1349_p6 = por %p1348_p3, %p1347_p2 }
  0x6a   : > { %p1350_p11 = pnand %p1349_p6, %p1343_p12 }
  0x6c   : > { %1353 = shalt.err (!%p1350_p11)
}
  0x6d   : > { %s1895_s5 = smov 4   ;;  %s1896_s4 = smov 64  }
  0x6e   : > { %1176 = dma.hbm_to_vmem [thread:$0]  (!%p1689_p7), %s1703_s19, 1024, %s1698_s20, %s1705_s1, %s1896_s4, %s1896_s4, %s1895_s5  }
  0x6f   : > { %186 = sbr.rel (%p1664_p0) target bundleno = 412 (0x19c), region = 28  ;;  %s1739_s10 = sand.u32 (!%p1664_p0), 1, %s1450_s26  }
  0x70   : > { %s878_s18 = sshll.u32 (!%p1664_p0), %s1739_s10, 7  ;;  %s189_s22 = scalar_lea.sflag (!%p1664_p0), [#allocation5], %s1739_s10 }
  0x71   : > { %s1745_s9 = scalar_lea.vmem (!%p1664_p0), [#allocation4], %s878_s18  ;;  %p1897_p2 = scmp.ne.s32.totalorder (!%p1664_p0), %s1882_s11, 0 }
  0x76   : > { %1421 = dma.done.wait (%p1897_p2), %s189_s22, 2048  }
  0x77   : > { %1423 = vsyncadd (%p1897_p2), %s189_s22, 4294965248  ;;  %s197_s1 = sand.u32 1, %s1438_s23   ;;  %p1898_p0 = scmp.ne.s32.totalorder %s1890_s21, 0 }
  0x78   : > { %s879_s19 = sshll.u32 %s197_s1, 6  ;;  %s198_s30 = scalar_lea.sflag [#allocation8], %s197_s1 }
  0x79   : > { %s1752_s20 = scalar_lea.vmem [#allocation7], %s879_s19 }
  0x7a   : > { %1425 = dma.done.wait (%p1898_p0), %s198_s30, 1024  }
  0x7b   : > { %1427 = vsyncadd (%p1898_p0), %s198_s30, 4294966272  ;;  %v1260_v0 = vld [vmem:[%s1752_s20] sm:$0xff]   ;;  %v1261_v1 = vld [vmem:[%s1752_s20 + $0x8] sm:$0xff]   ;;  %s1784_s11 = scalar_lea.vmem [#allocation9], %s878_s18  ;;  %s976_s21 = sshll.u32 %s1458_s27, 11 }
  0x7c   : > { %1096 = vmatprep.subr.bf16.mxu0 %v1260_v0  ;;  %1144 = vmatprep.subr.bf16.mxu1 %v1260_v0  ;;  %v1262_v2 = vld [vmem:[%s1752_s20 + $0x10] sm:$0xff]   ;;  %v1263_v3 = vld [vmem:[%s1752_s20 + $0x18] sm:$0xff]   ;;  %v1268_v4 = vld [vmem:[%s1745_s9] sm:$0xff]   ;;  %s759_s12 = sshll.u32 %s1784_s11, 4  ;;  %s1803_s16 = scalar_lea.hbm %s1869_s3, %s976_s21  ;;  %s1805_s12 = int_to_ptr.vmem [resolvable:$true] %s759_s12 }
  0x7d   : > { %1097 = vmatpush3.bf16.msra.mxu0 %v1260_v0  ;;  %1152 = vmatpush3.bf16.msra.mxu1 %v1260_v0  ;;  %v1269_v5 = vld [vmem:[%s1745_s9 + $0x40] sm:$0xff]   ;;  %v1265_v7 = vld [vmem:[%s1752_s20 + $0x28] sm:$0xff]   ;;  %v1266_v8 = vld [vmem:[%s1752_s20 + $0x30] sm:$0xff]   ;;  %s745_s27 = scalar_lea.sflag [#allocation6], %s1739_s10  ;;  %s1354_s17 = scalar_lea.vmem %s1805_s12, 2048 }
  0x7e   : > { %1098 = vmatprep.subr.bf16.mxu0 %v1261_v1  ;;  %1145 = vmatprep.subr.bf16.mxu1 %v1261_v1  ;;  %v1264_v6 = vld [vmem:[%s1752_s20 + $0x20] sm:$0xff]   ;;  %v1267_v9 = vld [vmem:[%s1752_s20 + $0x38] sm:$0xff]   ;;  %v1270_v10 = vld [vmem:[%s1745_s9 + $0x8] sm:$0xff]   ;;  %p1355_p7 = scmp.ne.s32.totalorder %s1805_s12, %s1354_s17  ;;  %p1899_p10 = scmp.ne.s32.totalorder %s1883_s14, 0 }
  0x7f   : > { %1112 = vmatprep.mubr.bf16.mxu0 %v1268_v4  ;;  %1128 = vmatprep.mubr.bf16.mxu1 %v1269_v5  ;;  %v1271_v11 = vld [vmem:[%s1745_s9 + $0x48] sm:$0xff]   ;;  %v1272_v12 = vld [vmem:[%s1745_s9 + $0x10] sm:$0xff]   ;;  %v1274_v14 = vld [vmem:[%s1745_s9 + $0x18] sm:$0xff]   ;;  %s1473_s5 = smov [#allocation9]  }
  0x80   : > { %v1273_v13 = vld [vmem:[%s1745_s9 + $0x50] sm:$0xff]   ;;  %v1275_v15 = vld [vmem:[%s1745_s9 + $0x58] sm:$0xff]   ;;  %v1276_v16 = vld [vmem:[%s1745_s9 + $0x20] sm:$0xff]   ;;  %p1356_p1 = pnand %p1355_p7, %p1899_p10  ;;  %s1358_s4 = sshll.u32 %s1473_s5, 4  ;;  %s1359_s4 = int_to_ptr.vmem [resolvable:$false] %s1358_s4 }
  0x81   : > { %1099 = vmatpush3.bf16.msra.mxu0 %v1261_v1  ;;  %1153 = vmatpush3.bf16.msra.mxu1 %v1261_v1  ;;  %v1277_v17 = vld [vmem:[%s1745_s9 + $0x60] sm:$0xff]   ;;  %v1278_v18 = vld [vmem:[%s1745_s9 + $0x28] sm:$0xff]   ;;  %v1280_v20 = vld [vmem:[%s1745_s9 + $0x30] sm:$0xff]   ;;  %s1360_s18 = scalar_lea.vmem %s1359_s4, 4096  ;;  %p1361_p9 = scmp.lt.s32.totalorder %s1805_s12, %s1359_s4 }
  0x82   : > { %1100 = vmatprep.subr.bf16.mxu0 %v1262_v2  ;;  %1146 = vmatprep.subr.bf16.mxu1 %v1262_v2  ;;  %v1279_v19 = vld [vmem:[%s1745_s9 + $0x68] sm:$0xff]   ;;  %v1281_v21 = vld [vmem:[%s1745_s9 + $0x70] sm:$0xff]   ;;  %v1282_v22 = vld [vmem:[%s1745_s9 + $0x38] sm:$0xff]   ;;  %p1357_p4 = pneg %p1356_p1  ;;  %p1362_p13 = scmp.lt.s32.totalorder %s1360_s18, %s1354_s17 }
  0x83   : > { %v1283_v23 = vld [vmem:[%s1745_s9 + $0x78] sm:$0xff]  }
  0x84   : > { %p1363_p5 = por %p1362_p13, %p1361_p9 }
  0x85   : > { %1101 = vmatpush3.bf16.msra.mxu0 %v1262_v2  ;;  %1154 = vmatpush3.bf16.msra.mxu1 %v1262_v2 }
  0x86   : > { %1102 = vmatprep.subr.bf16.mxu0 %v1263_v3  ;;  %1147 = vmatprep.subr.bf16.mxu1 %v1263_v3  ;;  %p1364_p8 = pnand %p1363_p5, %p1357_p4 }
  0x89   : > { %1103 = vmatpush3.bf16.msra.mxu0 %v1263_v3  ;;  %1155 = vmatpush3.bf16.msra.mxu1 %v1263_v3 }
  0x8a   : > { %1104 = vmatprep.subr.bf16.mxu0 %v1264_v6  ;;  %1148 = vmatprep.subr.bf16.mxu1 %v1264_v6 }
  0x8d   : > { %1105 = vmatpush3.bf16.msra.mxu0 %v1264_v6  ;;  %1156 = vmatpush3.bf16.msra.mxu1 %v1264_v6 }
  0x8e   : > { %1106 = vmatprep.subr.bf16.mxu0 %v1265_v7  ;;  %1149 = vmatprep.subr.bf16.mxu1 %v1265_v7 }
  0x91   : > { %1107 = vmatpush3.bf16.msra.mxu0 %v1265_v7  ;;  %1157 = vmatpush3.bf16.msra.mxu1 %v1265_v7 }
  0x92   : > { %1108 = vmatprep.subr.bf16.mxu0 %v1266_v8  ;;  %1150 = vmatprep.subr.bf16.mxu1 %v1266_v8 }
  0x95   : > { %1109 = vmatpush3.bf16.msra.mxu0 %v1266_v8  ;;  %1158 = vmatpush3.bf16.msra.mxu1 %v1266_v8 }
  0x96   : > { %1110 = vmatprep.subr.bf16.mxu0 %v1267_v9  ;;  %1151 = vmatprep.subr.bf16.mxu1 %v1267_v9 }
  0x99   : > { %1111 = vmatpush3.bf16.msra.mxu0 %v1267_v9  ;;  %1159 = vmatpush3.bf16.msra.mxu1 %v1267_v9 }
  0x9c   : > { %1113 = vmatmul.mubr.bf16.vlgmr.msra.gmra.mrb[0].mxu0 %v1270_v10  ;;  %1129 = vmatmul.mubr.bf16.vlgmr.msra.gmra.mrb[0].mxu1 %v1271_v11 }
  0x9d   : > { %1116 = vmatprep.mubr.bf16.mxu0 %v1272_v12  ;;  %1132 = vmatprep.mubr.bf16.mxu1 %v1273_v13 }
  0xa4   : > { %1117 = vmatmul.mubr.bf16.gmra.mrb[4].mxu0 %v1274_v14  ;;  %1133 = vmatmul.mubr.bf16.gmra.mrb[4].mxu1 %v1275_v15 }
  0xa5   : > { %1120 = vmatprep.mubr.bf16.mxu0 %v1276_v16  ;;  %1136 = vmatprep.mubr.bf16.mxu1 %v1277_v17 }
  0xac   : > { %1121 = vmatmul.mubr.bf16.gmra.mrb[8].mxu0 %v1278_v18  ;;  %1137 = vmatmul.mubr.bf16.gmra.mrb[8].mxu1 %v1279_v19 }
  0xad   : > { %1124 = vmatprep.mubr.bf16.mxu0 %v1280_v20  ;;  %1140 = vmatprep.mubr.bf16.mxu1 %v1281_v21 }
  0xb4   : > { %1125 = vmatmul.mubr.bf16.gmra.mrb[12].mxu0 %v1282_v22  ;;  %1141 = vmatmul.mubr.bf16.gmra.mrb[12].mxu1 %v1283_v23 }
 0x16f   : > { %v1114_v24 = vpop.f32.mrb[0].mxu0  ;;  %v1130_v25 = vpop.f32.mrb[0].mxu1 }
 0x170   : > { %v457_v26 = vpop.f32.mrb[1].mxu0  ;;  %v521_v27 = vpop.f32.mrb[1].mxu1 }
 0x171   : > { %v1115_v28 = vpop.f32.mrb[2].mxu0  ;;  %v1131_v29 = vpop.f32.mrb[2].mxu1 }
 0x172   : > { %v985_v30 = vpack.c.bf16 %v1115_v28, %v1114_v24  ;;  %v1025_v31 = vpack.c.bf16 %v1131_v29, %v1130_v25  ;;  %v460_v32 = vpop.f32.mrb[3].mxu0  ;;  %v524_v33 = vpop.f32.mrb[3].mxu1 }
 0x173   : > { %v980_v34 = vpack.c.bf16 %v460_v32, %v457_v26  ;;  %v1020_v35 = vpack.c.bf16 %v524_v33, %v521_v27 }
 0x174   : > { %1057 = vst [vmem:[%s1784_s11 + $0x8] sm:$0xff] %v985_v30   ;;  %1065 = vst [vmem:[%s1784_s11 + $0x48] sm:$0xff] %v1025_v31  }
 0x175   : > { %981 = vst [vmem:[%s1784_s11] sm:$0xff] %v980_v34   ;;  %1064 = vst [vmem:[%s1784_s11 + $0x40] sm:$0xff] %v1020_v35  }
 0x177   : > { %v1118_v36 = vpop.f32.mrb[4].mxu0  ;;  %v1134_v37 = vpop.f32.mrb[4].mxu1 }
 0x178   : > { %v473_v38 = vpop.f32.mrb[5].mxu0  ;;  %v537_v39 = vpop.f32.mrb[5].mxu1 }
 0x179   : > { %v1119_v40 = vpop.f32.mrb[6].mxu0  ;;  %v1135_v41 = vpop.f32.mrb[6].mxu1 }
 0x17a   : > { %v995_v42 = vpack.c.bf16 %v1119_v40, %v1118_v36  ;;  %v1035_v43 = vpack.c.bf16 %v1135_v41, %v1134_v37  ;;  %v476_v44 = vpop.f32.mrb[7].mxu0  ;;  %v540_v45 = vpop.f32.mrb[7].mxu1 }
 0x17b   : > { %v990_v46 = vpack.c.bf16 %v476_v44, %v473_v38  ;;  %v1030_v47 = vpack.c.bf16 %v540_v45, %v537_v39 }
 0x17c   : > { %1059 = vst [vmem:[%s1784_s11 + $0x18] sm:$0xff] %v995_v42   ;;  %1067 = vst [vmem:[%s1784_s11 + $0x58] sm:$0xff] %v1035_v43  }
 0x17d   : > { %1058 = vst [vmem:[%s1784_s11 + $0x10] sm:$0xff] %v990_v46   ;;  %1066 = vst [vmem:[%s1784_s11 + $0x50] sm:$0xff] %v1030_v47  }
 0x17f   : > { %v1122_v48 = vpop.f32.mrb[8].mxu0  ;;  %v1138_v49 = vpop.f32.mrb[8].mxu1 }
 0x180   : > { %v489_v50 = vpop.f32.mrb[9].mxu0  ;;  %v553_v51 = vpop.f32.mrb[9].mxu1 }
 0x181   : > { %v1123_v52 = vpop.f32.mrb[10].mxu0  ;;  %v1139_v53 = vpop.f32.mrb[10].mxu1 }
 0x182   : > { %v1005_v54 = vpack.c.bf16 %v1123_v52, %v1122_v48  ;;  %v1045_v55 = vpack.c.bf16 %v1139_v53, %v1138_v49  ;;  %v492_v56 = vpop.f32.mrb[11].mxu0  ;;  %v556_v57 = vpop.f32.mrb[11].mxu1 }
 0x183   : > { %v1000_v58 = vpack.c.bf16 %v492_v56, %v489_v50  ;;  %v1040_v59 = vpack.c.bf16 %v556_v57, %v553_v51 }
 0x184   : > { %1061 = vst [vmem:[%s1784_s11 + $0x28] sm:$0xff] %v1005_v54   ;;  %1069 = vst [vmem:[%s1784_s11 + $0x68] sm:$0xff] %v1045_v55  }
 0x185   : > { %1060 = vst [vmem:[%s1784_s11 + $0x20] sm:$0xff] %v1000_v58   ;;  %1068 = vst [vmem:[%s1784_s11 + $0x60] sm:$0xff] %v1040_v59  }
 0x187   : > { %v1126_v60 = vpop.f32.mrb[12].mxu0  ;;  %v1142_v61 = vpop.f32.mrb[12].mxu1 }
 0x188   : > { %v505_v62 = vpop.f32.mrb[13].mxu0  ;;  %v569_v63 = vpop.f32.mrb[13].mxu1 }
 0x189   : > { %v1127_v0 = vpop.f32.mrb[14].mxu0  ;;  %v1143_v1 = vpop.f32.mrb[14].mxu1 }
 0x18a   : > { %v1015_v2 = vpack.c.bf16 %v1127_v0, %v1126_v60  ;;  %v1055_v3 = vpack.c.bf16 %v1143_v1, %v1142_v61  ;;  %v508_v4 = vpop.f32.mrb[15].mxu0  ;;  %v572_v5 = vpop.f32.mrb[15].mxu1 }
 0x18b   : > { %v1010_v6 = vpack.c.bf16 %v508_v4, %v505_v62  ;;  %v1050_v7 = vpack.c.bf16 %v572_v5, %v569_v63 }
 0x18c   : > { %1063 = vst [vmem:[%s1784_s11 + $0x38] sm:$0xff] %v1015_v2   ;;  %1071 = vst [vmem:[%s1784_s11 + $0x78] sm:$0xff] %v1055_v3  }
 0x18d   : > { %1062 = vst [vmem:[%s1784_s11 + $0x30] sm:$0xff] %v1010_v6   ;;  %1070 = vst [vmem:[%s1784_s11 + $0x70] sm:$0xff] %v1050_v7  }
 0x18e   : > { %1367 = shalt.err (!%p1364_p8)
}
 0x18f   : > { %s1368_s22 = scalar_lea.hbm %s1803_s16, 2048  ;;  %s1372_s19 = scalar_lea.hbm %s1869_s3, 6144 }
 0x190   : > { %p1369_p12 = scmp.ne.s32.totalorder %s1803_s16, %s1368_s22  ;;  %p1373_p11 = scmp.lt.u32.totalorder %s1803_s16, %s1869_s3 }
 0x191   : > { %p1374_p2 = scmp.lt.u32.totalorder %s1372_s19, %s1368_s22  ;;  %p1376_p7 = scmp.lt.u32.totalorder %s1368_s22, %s1803_s16 }
 0x192   : > { %p1370_p3 = pnand %p1369_p12, %p1899_p10 }
 0x193   : > { %p1375_p0 = por %p1374_p2, %p1373_p11 }
 0x194   : > { %p1371_p6 = pneg %p1370_p3 }
 0x195   : > { %p1377_p1 = por %p1376_p7, %p1375_p0 }
 0x197   : > { %p1378_p4 = pnand %p1377_p1, %p1371_p6 }
 0x199   : > { %1381 = shalt.err (!%p1378_p4)
}
 0x19a   : > { %s1474_s11 = smov 64   ;;  %s1475_s21 = smov 4  }
 0x19b   : > { %1166 = dma.vmem_to_hbm [thread:$0]  (%p1899_p10), %s1805_s12, 2048, %s1803_s16, %s745_s27, %s1474_s11, %s1474_s11, %s1475_s21  }
 0x19c PF: > { %p1182_p9 = scmp.ge.s32.totalorder %s1466_s29, 2  ;;  %s774_s7 = sand.u32 1, %s1446_s25  }
 0x19d   : > { %p1900_p13 = scmp.ne.s32.totalorder %s1884_s15, 0  ;;  %s775_s8 = scalar_lea.sflag [#allocation6], %s774_s7 }
 0x19f   : > { %p1178_p5 = pnand %p1182_p9, %p1900_p13 }
 0x1a1   : > { %1429 = dma.done.wait (!%p1178_p5), %s775_s8, 2048  }
 0x1a2   : > { %1431 = vsyncadd (!%p1178_p5), %s775_s8, 4294965248  ;;  %s26_s29 = sadd.s32 1, %s1466_s29   ;;  %s1901_s14 = sld [smem:[#allocation16_spill]] }
 0x1a3   : > { %p23_p8 = scmp.ge.s32.totalorder %s26_s29, 5   ;;  %s1902_s22 = smov %s1438_s23 }
 0x1a4   : > { %s1903_s23 = smov %s1442_s24  ;;  %s1904_s24 = smov %s1677_s6 }
 0x1a5   : > { %s1905_s25 = smov %s1450_s26  ;;  %s1906_s26 = smov %s1454_s0 }
 0x1a6   : > { %s1907_s0 = smov %s1595_s13  ;;  %s1908_s27 = smov %s1462_s28 }
 0x1a7   :  { %25 = sbr.rel (!%p23_p8) target bundleno = 22 (0x16), region = 86 }
 0x1a8   : > { %s1909_s28 = smov %s1901_s14 }
 0x1ae   :  { %780 = vsyncpa [#allocation5], 1 }
 0x1af   :  { %782 = vsyncpa [#allocation5 + $0x1], 1 }
 0x1b0   :  { %783 = vsyncpa [#allocation8], 1 }
 0x1b1   :  { %785 = vsyncpa [#allocation8 + $0x1], 1 }
 0x1b2   :  { %786 = vsyncpa [#allocation6], 1 }
 0x1b3   :  { %788 = vsyncpa [#allocation6 + $0x1], 1 }

</bundles_post_ra>
